<compile_context>
chip_gen: v5e
topology: v5e:2x2
jax: 0.10.0
libtpu: 0.0.40
codegen_flags: <defaults>
</compile_context>

<pallas_src>
import jax
import jax.numpy as jnp
from jax import lax
from jax.experimental import pallas as pl
from jax.experimental.pallas import tpu as pltpu


# ---------------------------------------------------------------------------
# Static network sizes (implied by the nn.Module: 1x20x20 input).
# ---------------------------------------------------------------------------
D_IN      = 1 * 20 * 20     # 400   flattened input (C, H, W)
H1        = 3 * 16 * 16     # 768   conv1 output, CHW-flattened (128-multiple)
H2        = 10 * 12 * 12    # 1440  conv2 output, CHW-flattened (PyTorch view order)
H2_PAD    = 1536            # 1440 padded to multiple of 128
H3        = 50              # fc1 out
H3_PAD    = 128
D_OUT     = 10              # fc2 out (logits)
D_OUT_PAD = 128


def _round_up(x, m):
    return (x + m - 1) // m * m


def _cdiv(a, b):
    return -(-a // b)


# ---------------------------------------------------------------------------
# One-time probe: does this JAX build accept single-buffered (Buffered(1))
# constant operands?  Runs eagerly at import so any rejection is caught here
# and we fall back to default (double) buffering instead of failing later.
# ---------------------------------------------------------------------------
def _probe_weight_pipeline_mode():
    try:
        mode = pl.Buffered(1)

        def _probe_kernel(x_ref, o_ref):
            o_ref[...] = x_ref[...] + 1.0

        f = pl.pallas_call(
            _probe_kernel,
            out_shape=jax.ShapeDtypeStruct((16, 128), jnp.float32),
            grid=(2,),
            in_specs=[pl.BlockSpec((8, 128), lambda i: (0, 0),
                                   pipeline_mode=mode)],
            out_specs=pl.BlockSpec((8, 128), lambda i: (i, 0)),
        )
        jax.block_until_ready(f(jnp.zeros((8, 128), jnp.float32)))
        return mode
    except Exception:   # feature probe only; any failure -> default buffering
        return None


_WEIGHT_PIPELINE_MODE = _probe_weight_pipeline_mode()


# ---------------------------------------------------------------------------
# Fused kernel: per batch tile, 4 MXU matmuls (bf16 in, f32 accumulate) with
# f32 bias + relu between them; all operands VMEM-resident.
# ---------------------------------------------------------------------------
def _fused_cnn_kernel(x_ref, w1_ref, b1_ref, w2_ref, b2_ref, w3_ref, b3_ref,
                      w4_ref, b4_ref, o_ref):
    f32, bf16 = jnp.float32, jnp.bfloat16
    h = x_ref[...]                                                     # bf16 (TB, 400)
    a = jnp.dot(h, w1_ref[...], preferred_element_type=f32) + b1_ref[...]
    h = jnp.maximum(a, 0.0).astype(bf16)                               # conv1+relu (TB, 768)
    a = jnp.dot(h, w2_ref[...], preferred_element_type=f32) + b2_ref[...]
    h = jnp.maximum(a, 0.0).astype(bf16)                               # conv2+relu (TB, 1536)
    a = jnp.dot(h, w3_ref[...], preferred_element_type=f32) + b3_ref[...]
    h = jnp.maximum(a, 0.0).astype(bf16)                               # fc1+relu   (TB, 128)
    o_ref[...] = (jnp.dot(h, w4_ref[...], preferred_element_type=f32)
                  + b4_ref[...]).astype(o_ref.dtype)                   # fc2        (TB, 128)


# ---------------------------------------------------------------------------
# One-time parameter folding: conv -> dense matrix, flatten perm, lane padding,
# bf16 weight cast (biases stay f32 for the f32 bias+relu path).
# ---------------------------------------------------------------------------
def _conv_to_dense(w, b, h_in, w_in):
    """Fold a stride-1 VALID Conv2d into a dense matrix on CHW-flattened tensors.

    w: (Cout, Cin, KH, KW) (PyTorch layout); b: (Cout,).
    Returns (Wd, bd) with Wd: (Cin*h_in*w_in, Cout*h_out*w_out) such that
        conv(x).reshape(N, -1) == x.reshape(N, -1) @ Wd + bd
    (both sides flattened in NCHW / (C, H, W) order).
    """
    cout, cin, kh, kw = w.shape
    h_out, w_out = h_in - kh + 1, w_in - kw + 1
    ey = jnp.stack([jnp.eye(h_in, h_out, k=-k, dtype=w.dtype) for k in range(kh)])
    ex = jnp.stack([jnp.eye(w_in, w_out, k=-k, dtype=w.dtype) for k in range(kw)])
    # Wd[cin, iy, ix, cout, oy, ox] = w[cout, cin, iy-oy, ix-ox]  (0 outside kernel)
    wd = jnp.einsum("ocku,kay,ubx->caboyx", w, ey, ex,
                    precision=lax.Precision.HIGHEST)
    wd = wd.reshape(cin * h_in * w_in, cout * h_out * w_out)
    bd = jnp.repeat(b, h_out * w_out)
    return wd, bd


def _pad2(a, rows, cols):
    return jnp.pad(a, ((0, rows - a.shape[0]), (0, cols - a.shape[1])))


def prepare_params(params):
    """Fold convs to dense mats, bake in the NCHW flatten, pad to 128 lanes,
    cast weights to bf16 (folding itself is done in f32)."""
    bf16, f32 = jnp.bfloat16, jnp.float32
    w1, b1 = _conv_to_dense(params["conv1_w"], params["conv1_b"], 20, 20)  # (400, 768)
    w2, b2 = _conv_to_dense(params["conv2_w"], params["conv2_b"], 16, 16)  # (768, 1440)
    w3 = params["fc1_w"].T                                                 # (1440, 50)
    w4 = params["fc2_w"].T                                                 # (50, 10)
    return {
        "w1": w1.astype(bf16),
        "b1": b1.reshape(1, H1).astype(f32),
        "w2": _pad2(w2, H1, H2_PAD).astype(bf16),
        "b2": jnp.pad(b2, (0, H2_PAD - H2)).reshape(1, H2_PAD).astype(f32),
        "w3": _pad2(w3, H2_PAD, H3_PAD).astype(bf16),
        "b3": jnp.pad(params["fc1_b"], (0, H3_PAD - H3)).reshape(1, H3_PAD).astype(f32),
        "w4": _pad2(w4, H3_PAD, D_OUT_PAD).astype(bf16),
        "b4": jnp.pad(params["fc2_b"], (0, D_OUT_PAD - D_OUT)).reshape(1, D_OUT_PAD).astype(f32),
    }


# ---------------------------------------------------------------------------
# Batch tiling: balanced tiles (cap padding waste), 16-row granularity (bf16
# sublane packing), and >=2 grid steps once the batch is compute-bound so the
# "parallel" grid axis can use both v7x TensorCores.
# ---------------------------------------------------------------------------
def _choose_batch_tiling(n, block_b):
    n16 = _round_up(max(n, 1), 16)
    num_tiles = _cdiv(n16, block_b)
    if n16 >= 256:                 # below this, weight-DMA dominates; 1 core is faster
        num_tiles = max(num_tiles, 2)
    tb = _round_up(_cdiv(n16, num_tiles), 16)
    n_pad = _round_up(n16, tb)
    return tb, n_pad


# ---------------------------------------------------------------------------
# Forward pass: one batch-tiled pallas_call.
# ---------------------------------------------------------------------------
def cnn_forward(dense_params, x_nchw, *, block_b=512):
    """x_nchw: (N, 1, 20, 20) float32 -> logits (N, 10) float32."""
    dp = dense_params
    n = x_nchw.shape[0]
    x2 = x_nchw.reshape(n, D_IN).astype(jnp.bfloat16)         # NCHW flatten (C=1), bf16 feed
    tb, n_pad = _choose_batch_tiling(n, block_b)
    if n_pad != n:
        x2 = jnp.pad(x2, ((0, n_pad - n), (0, 0)))
    grid = (n_pad // tb,)

    flops = 2 * n_pad * (D_IN * H1 + H1 * H2_PAD + H2_PAD * H3_PAD + H3_PAD * D_OUT_PAD)
    bytes_accessed = (2 * n_pad * D_IN                                   # bf16 input
                      + 4 * n_pad * D_OUT_PAD                            # f32 output
                      + 2 * (D_IN * H1 + H1 * H2_PAD + H2_PAD * H3_PAD
                             + H3_PAD * D_OUT_PAD)                       # bf16 weights
                      + 4 * (H1 + H2_PAD + H3_PAD + D_OUT_PAD))          # f32 biases

    resident = lambda i: (0, 0)   # weights/biases: whole array, VMEM-resident

    def wspec(shape):
        # Constant index map -> nothing to double-buffer; single-buffer when supported.
        if _WEIGHT_PIPELINE_MODE is None:
            return pl.BlockSpec(shape, resident)
        return pl.BlockSpec(shape, resident, pipeline_mode=_WEIGHT_PIPELINE_MODE)

    out = pl.pallas_call(
        _fused_cnn_kernel,
        out_shape=jax.ShapeDtypeStruct((n_pad, D_OUT_PAD), jnp.float32),
        grid=grid,
        in_specs=[
            pl.BlockSpec((tb, D_IN), lambda i: (i, 0)),       # activations, tiled over batch
            wspec((D_IN, H1)),
            wspec((1, H1)),
            wspec((H1, H2_PAD)),
            wspec((1, H2_PAD)),
            wspec((H2_PAD, H3_PAD)),
            wspec((1, H3_PAD)),
            wspec((H3_PAD, D_OUT_PAD)),
            wspec((1, D_OUT_PAD)),
        ],
        out_specs=pl.BlockSpec((tb, D_OUT_PAD), lambda i: (i, 0)),  # lane-dense (128) output
        compiler_params=pltpu.CompilerParams(
            dimension_semantics=("parallel",),        # batch tiles across v7x's 2 TCs
            vmem_limit_bytes=48 * 1024 * 1024,        # fits v7x 64 MiB physical VMEM
        ),
        cost_estimate=pl.CostEstimate(
            flops=flops, transcendentals=0, bytes_accessed=bytes_accessed),
    )(x2, dp["w1"], dp["b1"], dp["w2"], dp["b2"],
      dp["w3"], dp["b3"], dp["w4"], dp["b4"])
    return out[:n, :D_OUT]


# ---------------------------------------------------------------------------
# Deterministic synthetic parameters (PyTorch layouts) + pure-JAX reference.
# ---------------------------------------------------------------------------
def init_params(key):
    ks = jax.random.split(key, 8)
    s = 0.1
    return {
        "conv1_w": s * jax.random.normal(ks[0], (3, 1, 5, 5), jnp.float32),
        "conv1_b": s * jax.random.normal(ks[1], (3,), jnp.float32),
        "conv2_w": s * jax.random.normal(ks[2], (10, 3, 5, 5), jnp.float32),
        "conv2_b": s * jax.random.normal(ks[3], (10,), jnp.float32),
        "fc1_w":  s * jax.random.normal(ks[4], (50, 10 * 12 * 12), jnp.float32),
        "fc1_b":  s * jax.random.normal(ks[5], (50,), jnp.float32),
        "fc2_w":  s * jax.random.normal(ks[6], (10, 50), jnp.float32),
        "fc2_b":  s * jax.random.normal(ks[7], (10,), jnp.float32),
    }


def cnn_reference(params, x_nchw):
    hp = lax.Precision.HIGHEST
    dn = ("NCHW", "OIHW", "NCHW")
    y = lax.conv_general_dilated(x_nchw, params["conv1_w"], (1, 1), "VALID",
                                 dimension_numbers=dn, precision=hp)
    y = jnp.maximum(y + params["conv1_b"][None, :, None, None], 0.0)
    y = lax.conv_general_dilated(y, params["conv2_w"], (1, 1), "VALID",
                                 dimension_numbers=dn, precision=hp)
    y = jnp.maximum(y + params["conv2_b"][None, :, None, None], 0.0)
    y = y.reshape(y.shape[0], -1)                       # (N, 10*12*12), CHW order
    y = jnp.maximum(jnp.dot(y, params["fc1_w"].T, precision=hp) + params["fc1_b"], 0.0)
    return jnp.dot(y, params["fc2_w"].T, precision=hp) + params["fc2_b"]


if __name__ == "__main__":
    key = jax.random.PRNGKey(0)
    pkey, xkey = jax.random.split(key)
    params = init_params(pkey)
    # Input implied by the module: 1 channel, 20x20 spatial (-> 12x12 after two
    # valid 5x5 convs, matching the 10*12*12 flatten).
    x = jax.random.normal(xkey, (2, 1, 20, 20), jnp.float32)

    dense = jax.jit(prepare_params)(params)     # one-time weight folding (off hot path)
    fwd = jax.jit(cnn_forward)
    out = jax.block_until_ready(fwd(dense, x))

    assert out.shape == (2, 10) and out.dtype == jnp.float32
    ref = cnn_reference(params, x)
    err = float(jnp.max(jnp.abs(out - ref)))
    # Tolerance sized for bf16 weights/activations with f32 accumulation.
    assert err < 5e-2, f"mismatch vs reference: max abs err = {err}"
    print("KERNEL_OK")
</pallas_src>

<mosaic_0001>
module attributes {stable_mosaic.version = 11 : i64} {
  func.func @_probe_kernel(%arg0: i32, %arg1: memref<8x128xf32, #tpu.memory_space<vmem>>, %arg2: memref<8x128xf32, #tpu.memory_space<vmem>>) attributes {dimension_semantics = [#tpu.dimension_semantics<arbitrary>], iteration_bounds = array<i64: 2>, scalar_prefetch = 0 : i64, scratch_operands = 0 : i64, tpu.core_type = #tpu.core_type<tc>, window_params = [{pipeline_mode = #tpu.pipeline_mode<synchronous>, transform_indices = @transform_0, window_bounds = array<i64: 8, 128>}, {transform_indices = @transform_1, window_bounds = array<i64: 8, 128>}]} {
    %c0 = arith.constant 0 : index
    %c0_0 = arith.constant 0 : index
    %0 = vector.load %arg1[%c0, %c0_0] : memref<8x128xf32, #tpu.memory_space<vmem>>, vector<8x128xf32>
    %cst = arith.constant 1.000000e+00 : f32
    %1 = vector.broadcast %cst : f32 to vector<8x128xf32>
    %2 = arith.addf %0, %1 : vector<8x128xf32>
    %c0_1 = arith.constant 0 : index
    %c0_2 = arith.constant 0 : index
    %3 = vector.load %arg2[%c0_1, %c0_2] : memref<8x128xf32, #tpu.memory_space<vmem>>, vector<8x128xf32>
    tpu.vector_store %arg2[%c0_1, %c0_2], %2 {strides = array<i32>} : memref<8x128xf32, #tpu.memory_space<vmem>>, vector<8x128xf32>,
    return
  }
  func.func @transform_0(%arg0: i32) -> (i32, i32) {
    %c0_i32 = arith.constant 0 : i32
    %c0_i32_0 = arith.constant 0 : i32
    %c0_i32_1 = arith.constant 0 : i32
    return %c0_i32, %c0_i32_0 : i32, i32
  }
  func.func @transform_1(%arg0: i32) -> (i32, i32) {
    %c0_i32 = arith.constant 0 : i32
    %c0_i32_0 = arith.constant 0 : i32
    return %arg0, %c0_i32 : i32, i32
  }
}

</mosaic_0001>

<bundles_post_ra>
// kernel: tpu_custom_call.1
= control target key start
LH: loop header
LB: loop body
LE: loop exit
PB: predicated region body
PF: predicated region fallthrough
CT: control target
= control target key end

     0   :  { %6 = vsyncpa [#allocation3], 0  ;;  %s441_s0 = inlined_call_operand.hbm [shape: f32[8,128], index: 0, kind: input, shape index: {}]   ;;  %s442_s1 = inlined_call_operand.hbm [shape: f32[16,128], index: 1, kind: output, shape index: {}]  }
   0x1   :  { %7 = vsyncpa [#allocation4], 0 }
   0x2   :  { %9 = vsyncpa [#allocation4 + $0x1], 0  ;;  %s357_s6 = smov 0   ;;  %s359_s7 = smov 0  }
   0x3   :  { %s361_s8 = smov 0   ;;  %s363_s9 = smov 0  }
   0x4 LB: > { %s378_s10 = sadd.s32 4294967295, %s344_s9   ;;  %s188_s11 = sadd.s32 4294967294, %s344_s9   ;;  %s344_s9 = sphi %s363_s9, %s448_s9   ;;  %s340_s8 = sphi %s361_s8, %s447_s8   ;;  %s336_s7 = sphi %s359_s7, %s446_s7   ;;  %s332_s6 = sphi %s357_s6, %s445_s6  }
   0x5   : > { %s382_s12 = sadd.s32 1, %s344_s9   ;;  %s43_s13 = sadd.s32 1, %s340_s8 }
   0x6   : > { %s40_s14 = ssub.s32 %s344_s9, %s382_s12  ;;  %p53_p0 = scmp.ne.s32.totalorder %s340_s8, %s336_s7 }
   0x7   : > { %p41_p1 = scmp.eq.s32.totalorder %s40_s14, 0  ;;  %p54_p2 = scmp.eq.s32.totalorder %s378_s10, 1 }
   0x8   : > { %p59_p3 = scmp.ne.s32.totalorder %s336_s7, %s332_s6  ;;  %p60_p4 = scmp.eq.s32.totalorder %s188_s11, 1 }
   0x9   : > { %s393_s15 = scalar_select %p41_p1, %s340_s8, %s43_s13  }
   0xa   : > { %p395_p5 = por %p54_p2, %p53_p0  ;;  %p399_p6 = por %p60_p4, %p59_p3 }
   0xb   : > { %p189_p7 = scmp.ge.s32.totalorder %s344_s9, 1  ;;  %p67_p8 = scmp.lt.s32.totalorder %s344_s9, 3 }
   0xc   : > { %p212_p9 = scmp.eq.s32.totalorder %s378_s10, 0  ;;  %s79_s20 = sshll.u32 %s441_s0, 4  ;;  %s80_s20 = int_to_ptr.hbm [resolvable:$true] %s79_s20 }
   0xd   : > { %p68_p10 = pnand %p189_p7, %p67_p8  ;;  %s346_s21 = smov [#allocation2]  }
   0xe   : > { %s81_s22 = sshll.u32 %s346_s21, 4  ;;  %s82_s22 = int_to_ptr.vmem [resolvable:$true] %s81_s22 }
   0xf   : > { %p204_p11 = pneg %p68_p10  ;;  %94 = sbr.rel (%p68_p10) target bundleno = 37 (0x25), region = 24 }
  0x11   : > { %p205_p12 = pnand %p212_p9, %p204_p11 }
  0x13   : > { %207 = dma.hbm_to_vmem [thread:$0]  (!%p205_p12), %s80_s20, 128, %s82_s22, [#allocation3]  }
  0x14   : > { %323 = dma.done.wait (%p212_p9), [#allocation3], 128  }
  0x15   : > { %325 = vsyncadd (%p212_p9), [#allocation3], 4294967168  ;;  %s107_s23 = sand.u32 1, %s336_s7   ;;  %s195_s24 = sshll.u32 %s378_s10, 3  ;;  %v110_v0 = vld [vmem:[#allocation2] sm:$0xff] }
  0x16   : > { %s193_s25 = sshll.u32 %s107_s23, 3  ;;  %s124_s28 = scalar_lea.hbm %s442_s1, %s195_s24  ;;  %v111_v1 = vadd.f32 1.0, %v110_v0 }
  0x17   : > { %s109_s29 = scalar_lea.vmem [#allocation5], %s193_s25  ;;  %s128_s2 = sshll.u32 %s124_s28, 4  ;;  %s129_s2 = int_to_ptr.hbm [resolvable:$true] %s128_s2 }
  0x18   : > { %s126_s30 = sshll.u32 %s109_s29, 4  ;;  %112 = vst [vmem:[%s109_s29] sm:$0xff] %v111_v1  ;;  %s114_s3 = scalar_lea.sflag [#allocation4], %s107_s23  ;;  %s127_s30 = int_to_ptr.vmem [resolvable:$true] %s126_s30 }
  0x19   : > { %s292_s4 = sshra.s32 %s129_s2, 4  ;;  %s298_s13 = scalar_lea.hbm %s442_s1, 16  ;;  %s293_s4 = int_to_ptr.hbm [resolvable:$true] %s292_s4 }
  0x1a   : > { %s294_s5 = scalar_lea.hbm %s293_s4, 8  ;;  %p299_p2 = scmp.lt.s32.totalorder %s293_s4, %s442_s1 }
  0x1b   : > { %p295_p13 = scmp.ne.s32.totalorder %s293_s4, %s294_s5  ;;  %p300_p3 = scmp.lt.s32.totalorder %s298_s13, %s294_s5 }
  0x1d   : > { %p296_p0 = pnand %p295_p13, %p395_p5  ;;  %p301_p4 = por %p300_p3, %p299_p2 }
  0x1f   : > { %p297_p1 = pneg %p296_p0 }
  0x21   : > { %p302_p7 = pnand %p301_p4, %p297_p1 }
  0x23   : > { %305 = shalt.err (!%p302_p7)
}
  0x24   : > { %202 = dma.vmem_to_hbm [thread:$0]  (%p395_p5), %s127_s30, 128, %s129_s2, %s114_s3  }
  0x25 PF: > { %p214_p8 = scmp.ge.s32.totalorder %s344_s9, 2  ;;  %s140_s19 = sand.u32 1, %s332_s6  }
  0x26   : > { %s141_s20 = scalar_lea.sflag [#allocation4], %s140_s19 }
  0x27   : > { %p209_p9 = pnand %p214_p8, %p399_p6 }
  0x29   : > { %p210_p10 = pneg %p209_p9 }
  0x2b   : > { %327 = dma.done.wait (%p210_p10), %s141_s20, 128  }
  0x2c   : > { %329 = vsyncadd (%p210_p10), %s141_s20, 4294967168  ;;  %p12_p11 = scmp.ge.s32.totalorder %s382_s12, 4   ;;  %s445_s6 = smov %s336_s7 }
  0x2d   : > { %s446_s7 = smov %s340_s8  ;;  %s447_s8 = smov %s393_s15 }
  0x2e   : > { %s448_s9 = smov %s382_s12  ;;  %14 = sbr.rel (!%p12_p11) target bundleno = 4 (0x4), region = 61 }
  0x33   :  { %147 = vsyncpa [#allocation3], 1 }
  0x34   :  { %149 = vsyncpa [#allocation3 + $0x1], 1 }
  0x35   :  { %150 = vsyncpa [#allocation4], 1 }
  0x36   :  { %152 = vsyncpa [#allocation4 + $0x1], 1 }

</bundles_post_ra>
